<compile_context>
chip_gen: v5e
topology: v5e:2x2
jax: 0.10.0
libtpu: 0.0.40
codegen_flags: <defaults>
</compile_context>

<pallas_src>
import math
from functools import partial

import jax
import jax.numpy as jnp
from jax.experimental import pallas as pl
from jax.experimental.pallas import tpu as pltpu


def _make_pe(max_seq_len: int, d_model: int) -> jnp.ndarray:
    """Sinusoidal positional-encoding table, same math as the PyTorch __init__."""
    position = jnp.arange(max_seq_len, dtype=jnp.float32)[:, None]            # [L, 1]
    div_term = jnp.exp(
        jnp.arange(0, d_model, 2, dtype=jnp.float32)
        * (-math.log(10000.0) / d_model)
    )                                                                          # [D/2]
    angles = position * div_term                                               # [L, D/2]
    pe = jnp.zeros((max_seq_len, d_model), dtype=jnp.float32)
    pe = pe.at[:, 0::2].set(jnp.sin(angles))
    pe = pe.at[:, 1::2].set(jnp.cos(angles))
    return pe


def _add_pe_kernel(x_ref, pe_ref, o_ref):
    # x_ref: (bt, cols); pe_ref: (1, cols) broadcast over the folded batch rows.
    o_ref[...] = (x_ref[...] + pe_ref[...]).astype(o_ref.dtype)


def _add_pe_dropout_kernel(x_ref, pe_ref, bits_ref, o_ref, *, keep_thresh, inv_keep):
    y = x_ref[...] + pe_ref[...]
    # Inverted dropout via a single uint32 threshold compare: P(keep) = 1 - p.
    keep = bits_ref[...] >= jnp.uint32(keep_thresh)
    o_ref[...] = jnp.where(keep, y * inv_keep, jnp.zeros_like(y)).astype(o_ref.dtype)


def _plan_tiles(batch: int, row_elems: int, itemsize: int,
                target_bytes: int = 2 << 20):
    """Pick (bt, cols) for blocks over the folded (batch, S*D) array.

    cols is a multiple of 128 (or the full row); bt is the full batch or a
    multiple of the dtype's sublane count.  Keeps >=2 parallel grid steps when
    the problem is big enough (v7x megacore)."""
    sub = {4: 8, 2: 16, 1: 32}.get(itemsize, 8)

    cols_budget = max(128, (target_bytes // itemsize // 128) * 128)
    cols = row_elems if row_elems <= cols_budget else cols_budget

    bt = max(1, target_bytes // (cols * itemsize))
    if bt >= batch:
        bt = batch                                   # full dim is always legal
    else:
        bt = min(batch, max(sub, (bt // sub) * sub))  # sublane-multiple rows

    # v7x has 2 TensorCores: don't collapse the whole problem into one block.
    if pl.cdiv(row_elems, cols) * pl.cdiv(batch, bt) < 2:
        if row_elems >= 256:
            cols = max(128, ((row_elems // 2) // 128) * 128)
        elif batch >= 2 * sub:
            bt = max(sub, ((batch // 2) // sub) * sub)
    return bt, cols


def positional_encoder(
    x: jnp.ndarray,
    pe: jnp.ndarray,
    *,
    dropout_p: float = 0.1,
    training: bool = False,
    rng_key=None,
    target_tile_bytes: int = 2 << 20,
) -> jnp.ndarray:
    """Forward of the PyTorch PositionalEncoder (batch_first=True).

    x: [B, S, D]; pe: [max_seq_len, D].  Returns dropout(x + pe[:S]).
    Note: to make the in-place x->out alias real, donate x at the caller's jit
    boundary (jax.jit(..., donate_argnums=...)); otherwise XLA copies x.
    """
    B, S, D = x.shape
    assert pe.shape[0] >= S and pe.shape[1] == D
    dtype = x.dtype
    itemsize = jnp.dtype(dtype).itemsize
    row_elems = S * D

    p = float(dropout_p)
    use_dropout = bool(training) and p > 0.0
    if use_dropout and p >= 1.0:
        return jnp.zeros_like(x)                      # nn.Dropout(p=1.0)

    # Fold (S, D) into one lane-dense last dim (free, contiguous reshape).
    x2d = x.reshape(B, row_elems)
    pe2d = pe[:S].astype(dtype).reshape(1, row_elems)  # cast once, wrapper-side

    bt, cols = _plan_tiles(B, row_elems, itemsize, target_tile_bytes)
    grid = (pl.cdiv(row_elems, cols), pl.cdiv(B, bt))  # (cols outer, batch inner)

    x_spec = pl.BlockSpec((bt, cols), lambda c, b: (b, c))
    pe_spec = pl.BlockSpec((1, cols), lambda c, b: (0, c))   # resident across inner b
    out_spec = pl.BlockSpec((bt, cols), lambda c, b: (b, c))

    compiler_params = pltpu.CompilerParams(
        dimension_semantics=("parallel", "parallel"),
        vmem_limit_bytes=32 * 1024 * 1024,
    )

    if not use_dropout:
        out2d = pl.pallas_call(
            _add_pe_kernel,
            out_shape=jax.ShapeDtypeStruct((B, row_elems), dtype),
            grid=grid,
            in_specs=[x_spec, pe_spec],
            out_specs=out_spec,
            input_output_aliases={0: 0},              # x -> out (needs donation to be free)
            compiler_params=compiler_params,
        )(x2d, pe2d)
    else:
        if rng_key is None:
            rng_key = jax.random.PRNGKey(0)
        # TODO(synk): on a native TPU backend the random words could be drawn
        # in-kernel with pltpu.prng_seed / pltpu.prng_random_bits (saves the
        # 4 B/elem bits read, and half the words for bf16); they are generated
        # wrapper-side here because the TPU PRNG primitives have no lowering in
        # interpret/CPU mode.
        bits = jax.random.bits(rng_key, (B, row_elems), dtype=jnp.uint32)
        keep_thresh = min(int(round(p * 4294967296.0)), 4294967295)
        kernel = partial(_add_pe_dropout_kernel,
                         keep_thresh=keep_thresh, inv_keep=1.0 / (1.0 - p))
        out2d = pl.pallas_call(
            kernel,
            out_shape=jax.ShapeDtypeStruct((B, row_elems), dtype),
            grid=grid,
            in_specs=[x_spec, pe_spec, x_spec],        # bits streamed like x
            out_specs=out_spec,
            input_output_aliases={0: 0},
            compiler_params=compiler_params,
        )(x2d, pe2d, bits)

    return out2d.reshape(B, S, D)


if __name__ == "__main__":
    key = jax.random.PRNGKey(0)
    B, S, D = 2, 16, 128          # small, lane-dense demo shape
    MAX_SEQ_LEN = 64

    x = jax.random.normal(key, (B, S, D), dtype=jnp.float32)
    pe = _make_pe(MAX_SEQ_LEN, D)
    ref = x + pe[:S][None, :, :]

    # Eval-mode forward (dropout is identity), matching module.eval() semantics.
    out = jax.block_until_ready(
        positional_encoder(x, pe, dropout_p=0.1, training=False)
    )
    assert out.shape == (B, S, D)
    assert jnp.allclose(out, ref, atol=1e-6), "eval-path mismatch vs reference"

    # Training-mode forward: inverted dropout; every element must be either 0
    # or (x + pe) / (1 - p).
    p = 0.1
    out_tr = jax.block_until_ready(
        positional_encoder(x, pe, dropout_p=p, training=True,
                           rng_key=jax.random.PRNGKey(123))
    )
    assert out_tr.shape == (B, S, D)
    scaled = ref / (1.0 - p)
    ok = jnp.isclose(out_tr, scaled, atol=1e-5, rtol=1e-5) | (out_tr == 0.0)
    assert bool(jnp.all(ok)), "training-path values not in {0, (x+pe)/(1-p)}"

    print("KERNEL_OK")
</pallas_src>

<mosaic_0001>
module attributes {stable_mosaic.version = 11 : i64} {
  func.func @_add_pe_kernel(%arg0: i32, %arg1: i32, %arg2: memref<2x1024xf32, #tpu.memory_space<vmem>>, %arg3: memref<1x1024xf32, #tpu.memory_space<vmem>>, %arg4: memref<2x1024xf32, #tpu.memory_space<vmem>>) attributes {dimension_semantics = [#tpu.dimension_semantics<parallel>, #tpu.dimension_semantics<parallel>], iteration_bounds = array<i64: 2, 1>, scalar_prefetch = 0 : i64, scratch_operands = 0 : i64, tpu.core_type = #tpu.core_type<tc>, window_params = [{transform_indices = @transform_0, window_bounds = array<i64: 2, 1024>}, {transform_indices = @transform_1, window_bounds = array<i64: 1, 1024>}, {transform_indices = @transform_2, window_bounds = array<i64: 2, 1024>}]} {
    %c0 = arith.constant 0 : index
    %c0_0 = arith.constant 0 : index
    %0 = vector.load %arg2[%c0, %c0_0] : memref<2x1024xf32, #tpu.memory_space<vmem>>, vector<2x1024xf32>
    %c0_1 = arith.constant 0 : index
    %c0_2 = arith.constant 0 : index
    %1 = vector.load %arg3[%c0_1, %c0_2] : memref<1x1024xf32, #tpu.memory_space<vmem>>, vector<1x1024xf32>
    %2 = vector.broadcast %1 : vector<1x1024xf32> to vector<2x1024xf32>
    %3 = arith.addf %0, %2 : vector<2x1024xf32>
    %c0_3 = arith.constant 0 : index
    %c0_4 = arith.constant 0 : index
    %4 = vector.load %arg4[%c0_3, %c0_4] : memref<2x1024xf32, #tpu.memory_space<vmem>>, vector<2x1024xf32>
    tpu.vector_store %arg4[%c0_3, %c0_4], %3 {strides = array<i32>} : memref<2x1024xf32, #tpu.memory_space<vmem>>, vector<2x1024xf32>,
    return
  }
  func.func @transform_0(%arg0: i32, %arg1: i32) -> (i32, i32) {
    %c0_i32 = arith.constant 0 : i32
    return %arg1, %arg0 : i32, i32
  }
  func.func @transform_1(%arg0: i32, %arg1: i32) -> (i32, i32) {
    %c0_i32 = arith.constant 0 : i32
    %c0_i32_0 = arith.constant 0 : i32
    return %c0_i32, %arg0 : i32, i32
  }
  func.func @transform_2(%arg0: i32, %arg1: i32) -> (i32, i32) {
    %c0_i32 = arith.constant 0 : i32
    return %arg1, %arg0 : i32, i32
  }
}

</mosaic_0001>

<bundles_post_ra>
// kernel: tpu_custom_call.1
= control target key start
LH: loop header
LB: loop body
LE: loop exit
PB: predicated region body
PF: predicated region fallthrough
CT: control target
= control target key end

     0   :  { %7 = vsyncpa [#allocation3], 0  ;;  %s689_s0 = inlined_call_operand.hbm [shape: f32[2,2048], index: 0, kind: input, shape index: {}, may-alias: {0,2}]   ;;  %s690_s1 = inlined_call_operand.vmem [shape: f32[1,2048], index: 1, kind: input, shape index: {}]   ;;  %s691_s2 = inlined_call_operand.hbm [shape: f32[2,2048], index: 2, kind: output, shape index: {}, may-alias: {0,2}]  }
   0x1   :  { %9 = vsyncpa [#allocation3 + $0x1], 0 }
   0x2   :  { %10 = vsyncpa [#allocation4], 0 }
   0x3   :  { %12 = vsyncpa [#allocation4 + $0x1], 0  ;;  %s555_s9 = smov 0   ;;  %s557_s10 = smov 0  }
   0x4   :  { %s559_s11 = smov 0   ;;  %s561_s12 = smov 0  }
   0x5   :  { %s563_s13 = smov 0   ;;  %s565_s14 = smov 0  }
   0x6 LB: > { %s346_s15 = sadd.s32 4294967295, %s538_s14   ;;  %s347_s16 = sadd.s32 4294967294, %s538_s14   ;;  %s538_s14 = sphi %s565_s14, %s18_s14   ;;  %s534_s13 = sphi %s563_s13, %s700_s13   ;;  %s530_s12 = sphi %s561_s12, %s699_s12   ;;  %s526_s11 = sphi %s559_s11, %s698_s11   ;;  %s522_s10 = sphi %s557_s10, %s697_s10   ;;  %s518_s9 = sphi %s555_s9, %s696_s9  }
   0x7   : > { %s30_s17 = sadd.s32 1, %s534_s13  ;;  %s39_s18 = sadd.s32 1, %s526_s11 }
   0x8   : > { %p32_p0 = scmp.ge.s32.totalorder %s30_s17, 2  ;;  %p46_p1 = scmp.ne.s32.totalorder %s526_s11, %s522_s10 }
   0x9   : > { %p47_p2 = scmp.eq.s32.totalorder %s538_s14, 0  ;;  %p52_p3 = scmp.ne.s32.totalorder %s522_s10, %s518_s9 }
   0xa   : > { %s702_s17 = smov (%p32_p0, %s30_s17), 0  ;;  %p53_p5 = scmp.eq.s32.totalorder %s346_s15, 0 }
   0xb   : > { %p596_p4 = por %p47_p2, %p46_p1  ;;  %s35_s20 = ssub.s32 %s534_s13, %s702_s17 }
   0xc   : > { %p104_p6 = scmp.eq.s32.totalorder %s346_s15, 1  ;;  %p37_p7 = scmp.eq.s32.totalorder %s35_s20, 0 }
   0xd   : > { %p602_p8 = por %p53_p5, %p52_p3  ;;  %p110_p10 = scmp.eq.s32.totalorder %s347_s16, 1 }
   0xe   : > { %p606_p9 = por %p104_p6, %p46_p1  ;;  %p349_p12 = scmp.ge.s32.totalorder %s538_s14, 2 }
   0xf   : > { %s611_s23 = scalar_select %p37_p7, %s526_s11, %s39_s18  }
  0x10   : > { %p613_p11 = por %p110_p10, %p52_p3  ;;  %p376_p13 = scmp.lt.s32.totalorder %s538_s14, 2 }
  0x11   : > { %s130_s25 = sand.u32 1, %s526_s11   ;;  %s362_s27 = sshll.u32 %s534_s13, 4 }
  0x12   : > { %s350_s26 = sshll.u32 %s130_s25, 4  ;;  %s141_s30 = scalar_lea.hbm %s689_s0, %s362_s27 }
  0x13   : > { %s134_s3 = scalar_lea.vmem [#allocation2], %s350_s26  ;;  %s143_s5 = sshll.u32 %s141_s30, 4  ;;  %s144_s5 = int_to_ptr.hbm [resolvable:$true] %s143_s5 }
  0x14   : > { %s145_s4 = sshll.u32 %s134_s3, 4  ;;  %p369_p0 = pnand %p376_p13, %p596_p4  ;;  %s146_s4 = int_to_ptr.vmem [resolvable:$true] %s145_s4 }
  0x15   : > { %p353_p1 = scmp.ge.s32.totalorder %s538_s14, 1  ;;  %p158_p2 = scmp.lt.s32.totalorder %s538_s14, 3 }
  0x16   : > { %s131_s6 = scalar_lea.sflag [#allocation3], %s130_s25 }
  0x17   : > { %371 = dma.hbm_to_vmem [thread:$0]  (!%p369_p0), %s144_s5, 256, %s146_s4, %s131_s6  }
  0x18   : > { %p159_p3 = pnand %p353_p1, %p158_p2 }
  0x19   : > { %s629_s7 = sand.u32 (!%p159_p3), 1, %s522_s10  }
  0x1a   : > { %162 = sbr.rel (%p159_p3) target bundleno = 50 (0x32), region = 28  ;;  %s354_s8 = sshll.u32 (!%p159_p3), %s629_s7, 4 }
  0x1b   : > { %s165_s15 = scalar_lea.sflag (!%p159_p3), [#allocation3], %s629_s7  ;;  %s633_s16 = scalar_lea.vmem (!%p159_p3), [#allocation2], %s354_s8 }
  0x1f   : > { %509 = dma.done.wait (%p602_p8), %s165_s15, 256  }
  0x20   : > { %511 = vsyncadd (%p602_p8), %s165_s15, 4294967040  ;;  %s356_s18 = sshll.u32 %s530_s12, 3  ;;  %s363_s26 = sshll.u32 %s530_s12, 4  ;;  %vm219_vm0 = vcmask 1041408   ;;  %vm221_vm1 = vcmask 1045508   ;;  %vm223_vm2 = vcmask 1043456  }
  0x21   : > { %p196_p4 = scmp.lt.s32.totalorder %s356_s18, 15  ;;  %s248_s28 = scalar_lea.hbm %s691_s2, %s363_s26  ;;  %v201_v12 = vld [vmem:[%s633_s16] sm:$0xff]  ;;  %v202_v18 = vld [vmem:[%s633_s16 + $0x8] sm:$0xff] }
  0x22   : > { %s193_s12 = scalar_lea.vmem [#allocation5], %s354_s8  ;;  %s252_s30 = sshll.u32 %s248_s28, 4  ;;  %s253_s30 = int_to_ptr.hbm [resolvable:$true] %s252_s30 }
  0x23   : > { %s704_s18 = smov (!%p196_p4, %s356_s18), 15  ;;  %s250_s29 = sshll.u32 %s193_s12, 4  ;;  %s251_s29 = int_to_ptr.vmem [resolvable:$true] %s250_s29 }
  0x24   : > { %s198_s25 = scalar_lea.vmem %s690_s1, %s704_s18  ;;  %s235_s3 = scalar_lea.sflag [#allocation4], %s629_s7 }
  0x25   : > { %v203_v0 = vld [vmem:[%s198_s25] sm:$0xff]  ;;  %s470_s4 = sshra.s32 %s253_s30, 4  ;;  %s476_s15 = scalar_lea.hbm %s691_s2, 32  ;;  %s471_s4 = int_to_ptr.hbm [resolvable:$true] %s470_s4 }
  0x26   : > { %v205_v1 = vperm.slane %v203_v0, 0  ;;  %v206_v2 = vperm.slane %v203_v0, 1  ;;  %v207_v3 = vperm.slane %v203_v0, 2  ;;  %v208_v4 = vperm.slane %v203_v0, 3  ;;  %s472_s5 = scalar_lea.hbm %s471_s4, 16  ;;  %p477_p8 = scmp.lt.s32.totalorder %s471_s4, %s691_s2 }
  0x27   : > { %v209_v5 = vperm.slane %v203_v0, 4  ;;  %v210_v6 = vperm.slane %v203_v0, 5  ;;  %v211_v7 = vperm.slane %v203_v0, 6  ;;  %v212_v8 = vperm.slane %v203_v0, 7  ;;  %p473_p5 = scmp.ne.s32.totalorder %s471_s4, %s472_s5  ;;  %p478_p10 = scmp.lt.s32.totalorder %s476_s15, %s472_s5 }
  0x28   : > { %v213_v9 = vrot.slane %v206_v2, 6  ;;  %v214_v10 = vrot.slane %v207_v3, 4  ;;  %v215_v11 = vrot.slane %v208_v4, 2 }
  0x29   : > { %v216_v13 = vrot.slane %v210_v6, 6  ;;  %v217_v14 = vrot.slane %v211_v7, 4  ;;  %v218_v15 = vrot.slane %v212_v8, 2  ;;  %p474_p6 = pnand %p473_p5, %p606_p9  ;;  %p479_p13 = por %p478_p10, %p477_p8 }
  0x2a   : > { %v220_v16 = vsel %vm219_vm0, %v205_v1, %v213_v9  ;;  %v222_v17 = vsel %vm221_vm1, %v214_v10, %v215_v11 }
  0x2b   : > { %v224_v19 = vsel %vm223_vm2, %v220_v16, %v222_v17  ;;  %v225_v20 = vsel %vm219_vm0, %v209_v5, %v216_v13  ;;  %v226_v21 = vsel %vm221_vm1, %v217_v14, %v218_v15  ;;  %p475_p7 = pneg %p474_p6 }
  0x2c   : > { %v230_v22 = vadd.f32 %v224_v19, %v201_v12  ;;  %v227_v23 = vsel %vm223_vm2, %v225_v20, %v226_v21 }
  0x2d   : > { %v231_v24 = vadd.f32 %v227_v23, %v202_v18  ;;  %p480_p0 = pnand %p479_p13, %p475_p7 }
  0x2e   : > { %232 = vst [vmem:[%s193_s12] sm:$0xff] %v230_v22 }
  0x2f   : > { %233 = vst [vmem:[%s193_s12 + $0x8] sm:$0xff] %v231_v24 }
  0x30   : > { %483 = shalt.err (!%p480_p0)
}
  0x31   : > { %366 = dma.vmem_to_hbm [thread:$0]  (%p606_p9), %s251_s29, 256, %s253_s30, %s235_s3  }
  0x32 PF: > { %s264_s7 = sand.u32 1, %s518_s9   ;;  %p373_p1 = pnand %p349_p12, %p613_p11 }
  0x33   : > { %s265_s19 = scalar_lea.sflag [#allocation4], %s264_s7 }
  0x34   : > { %p374_p2 = pneg %p373_p1 }
  0x36   : > { %513 = dma.done.wait (%p374_p2), %s265_s19, 256  }
  0x37   : > { %515 = vsyncadd (%p374_p2), %s265_s19, 4294967040  ;;  %s18_s14 = sadd.s32 1, %s538_s14   ;;  %s696_s9 = smov %s522_s10 }
  0x38   : > { %p15_p3 = scmp.ge.s32.totalorder %s18_s14, 4   ;;  %s697_s10 = smov %s526_s11 }
  0x39   : > { %s698_s11 = smov %s611_s23  ;;  %s699_s12 = smov %s534_s13 }
  0x3a   : > { %s700_s13 = smov %s702_s17  ;;  %17 = sbr.rel (!%p15_p3) target bundleno = 6 (0x6), region = 76 }
  0x3f   :  { %271 = vsyncpa [#allocation3], 1 }
  0x40   :  { %273 = vsyncpa [#allocation3 + $0x1], 1 }
  0x41   :  { %274 = vsyncpa [#allocation4], 1 }
  0x42   :  { %276 = vsyncpa [#allocation4 + $0x1], 1 }

</bundles_post_ra>
